<compile_context>
chip_gen: v6e
topology: v6e:2x2x1
jax: 0.10.0
libtpu: 0.0.40
codegen_flags: <defaults>
</compile_context>

<pallas_src>
import functools

import jax
import jax.numpy as jnp
from jax.experimental import pallas as pl
from jax.experimental.pallas import tpu as pltpu


def _round_up(x, m):
    return ((x + m - 1) // m) * m


def _cdiv(a, b):
    return (a + b - 1) // b


# ---------- Pass 1: K-tiled patch-matmul (bf16 MXU / f32 acc) + stats --------
def _matmul_stats_kernel(p_ref, w_ref, y_ref, sum_ref, sq_ref, acc_ref):
    # p_ref:   (tm, tk)    bf16 im2col patch tile
    # w_ref:   (tk, Cp)    bf16 flattened conv-weight tile
    # y_ref:   (tm, Cp)    bf16 pre-BN conv output tile (written on last k)
    # sum_ref: (1, 8, Cp)  f32  per-tile partial channel sums
    # sq_ref:  (1, 8, Cp)  f32  per-tile partial channel sums of squares
    # acc_ref: (tm, Cp)    f32  VMEM accumulator (resident across k)
    k = pl.program_id(1)

    @pl.when(k == 0)
    def _():
        acc_ref[...] = jnp.zeros_like(acc_ref)

    acc_ref[...] += jnp.dot(p_ref[...], w_ref[...],
                            preferred_element_type=jnp.float32)

    @pl.when(k == pl.num_programs(1) - 1)
    def _():
        y = acc_ref[...]                              # f32 accumulator
        tm, cp = y.shape
        y3 = y.reshape(tm // 8, 8, cp)                # vreg-aligned regrouping
        sum_ref[...] = jnp.sum(y3, axis=0)[None]      # VALU-only partial sums
        sq_ref[...] = jnp.sum(y3 * y3, axis=0)[None]
        y_ref[...] = y.astype(y_ref.dtype)            # bf16 intermediate store


# ---------- Pass 2: normalize + affine + ReLU (elementwise streaming) --------
def _bn_relu_kernel(y_ref, scale_ref, shift_ref, o_ref):
    # y_ref: (tm2, Cp) bf16, scale/shift: (1, Cp) f32, o_ref: (tm2, Cp) f32
    y = y_ref[...].astype(jnp.float32)
    o_ref[...] = jnp.maximum(y * scale_ref[...] + shift_ref[...], 0.0)


# ---------- static tiling plan (runs in Python, outside jit) -----------------
def _vmem_limit_bytes():
    try:
        info = pltpu.get_tpu_info()
        phys = int(getattr(info, "vmem_capacity_bytes", 64 << 20))
    except Exception:  # no TPU query available -> v7x-safe lower bound
        phys = 64 << 20
    return max(32 << 20, min(phys - (16 << 20), 100 << 20))


def _plan(M, Kd, Cout, tile_m_hint):
    # lane-dense channel padding; 256-wide columns for the 256x256 MXUs
    lane = 256 if Cout > 128 else 128
    Cp = _round_up(Cout, lane)

    # contraction (Kd) tiling
    Kd_128 = _round_up(Kd, 128)
    tk_max = 2048
    if Kd_128 <= tk_max:
        tk, n_k = Kd_128, 1
    else:
        n_k = _cdiv(Kd_128, tk_max)
        tk = _round_up(_cdiv(Kd_128, n_k), 128)
    Kd_p = tk * n_k

    vmem_limit = _vmem_limit_bytes()
    budget = int(vmem_limit * 0.75)

    sub = 16 if M >= 16 else 8
    # pass-1 working set: 2*tm*tk*2 (patches) + 2*tk*Cp*2 (weights)
    #                   + 2*tm*Cp*2 (bf16 y)  + tm*Cp*4 (f32 acc) + stats
    fixed = 4 * tk * Cp + 64 * Cp * 4
    per_row = 4 * tk + 8 * Cp
    tm_vmem = max(sub, (budget - fixed) // per_row)
    tm_two = _round_up(_cdiv(M, 2), sub)     # keep >=2 tiles (v7x megacore)
    tm = max(sub, min(tile_m_hint, tm_vmem, tm_two))
    tm = max(sub, (tm // sub) * sub)

    M_p = _round_up(M, tm)
    n_tiles = M_p // tm

    # pass-2 tile: largest multiple of tm that divides M_p, stays in budget,
    # and still leaves >=2 tiles for v7x.
    tm2 = tm
    for f in range(1, n_tiles + 1):
        if n_tiles % f:
            continue
        cand = tm * f
        if cand > 2048 or cand * Cp * 12 > budget:
            continue
        if (n_tiles // f) >= 2 or n_tiles == 1:
            tm2 = cand
    return dict(Cp=Cp, tk=tk, n_k=n_k, Kd_p=Kd_p, tm=tm, M_p=M_p,
                n_tiles=n_tiles, tm2=tm2, vmem_limit=vmem_limit)


# ---------- jitted implementation --------------------------------------------
@functools.partial(jax.jit, static_argnames=(
    "K", "padding", "Cp", "tk", "n_k", "Kd_p", "tm", "M_p", "n_tiles",
    "tm2", "vmem_limit", "return_nhwc"))
def _conv_block_impl(x_nchw, weight, gamma, beta, *, K, padding, Cp, tk,
                     n_k, Kd_p, tm, M_p, n_tiles, tm2, vmem_limit,
                     return_nhwc):
    N, Cin, H, W = x_nchw.shape
    Cout = weight.shape[0]
    Hout = H + 2 * padding - K + 1
    Wout = W + 2 * padding - K + 1
    M = N * Hout * Wout
    Kd = Cin * K * K

    # ---- im2col glue, entirely in bf16 (gather/reshape only, no math) ------
    # TODO(synk): replace with in-kernel accumulation of the K*K shifted
    #             matmuls to remove the ~K*K HBM read amplification.
    xb = x_nchw.astype(jnp.bfloat16)
    xp = jnp.pad(xb, ((0, 0), (0, 0), (padding, padding), (padding, padding)))
    windows = [xp[:, :, i:i + Hout, j:j + Wout]
               for i in range(K) for j in range(K)]        # (N,Cin,Hout,Wout)
    patches = jnp.stack(windows, axis=2).transpose(0, 3, 4, 1, 2)
    patches = patches.reshape(M, Kd)
    # zero-padded rows contribute 0 to the BN partial sums (stats stay exact)
    patches = jnp.pad(patches, ((0, M_p - M), (0, Kd_p - Kd)))

    # weight (Cout, Cin, kH, kW) -> (Kd, Cout), matching the patch flatten order
    w_mat = weight.reshape(Cout, Kd).T.astype(jnp.bfloat16)
    w_mat = jnp.pad(w_mat, ((0, Kd_p - Kd), (0, Cp - Cout)))

    # ---- pass 1: tiled matmul (K-accumulated) + per-tile partial BN stats ---
    y_flat, p_sum, p_sq = pl.pallas_call(
        _matmul_stats_kernel,
        out_shape=(
            jax.ShapeDtypeStruct((M_p, Cp), jnp.bfloat16),
            jax.ShapeDtypeStruct((n_tiles, 8, Cp), jnp.float32),
            jax.ShapeDtypeStruct((n_tiles, 8, Cp), jnp.float32),
        ),
        grid=(n_tiles, n_k),
        in_specs=[
            pl.BlockSpec((tm, tk), lambda i, k: (i, k)),
            pl.BlockSpec((tk, Cp), lambda i, k: (k, 0)),
        ],
        out_specs=(
            pl.BlockSpec((tm, Cp), lambda i, k: (i, 0)),
            pl.BlockSpec((1, 8, Cp), lambda i, k: (i, 0, 0)),
            pl.BlockSpec((1, 8, Cp), lambda i, k: (i, 0, 0)),
        ),
        scratch_shapes=[pltpu.VMEM((tm, Cp), jnp.float32)],
        compiler_params=pltpu.CompilerParams(
            dimension_semantics=("parallel", "arbitrary"),
            vmem_limit_bytes=vmem_limit),
    )(patches, w_mat)

    # ---- tiny JAX glue: reduce partials, fold BN into per-channel scale/shift
    sum_c = jnp.sum(p_sum, axis=(0, 1))                    # (Cp,)
    sq_c = jnp.sum(p_sq, axis=(0, 1))                      # (Cp,)
    inv_m = 1.0 / M                                        # true row count
    mean = sum_c * inv_m
    var = jnp.maximum(sq_c * inv_m - mean * mean, 0.0)     # biased var (train)
    gamma_p = jnp.pad(gamma.astype(jnp.float32), (0, Cp - Cout))
    beta_p = jnp.pad(beta.astype(jnp.float32), (0, Cp - Cout))
    scale = gamma_p * jax.lax.rsqrt(var + 1e-5)
    shift = beta_p - mean * scale

    # ---- pass 2: normalize + affine + ReLU (bf16 in, f32 out) ---------------
    n_tiles2 = M_p // tm2
    out_flat = pl.pallas_call(
        _bn_relu_kernel,
        out_shape=jax.ShapeDtypeStruct((M_p, Cp), jnp.float32),
        grid=(n_tiles2,),
        in_specs=[
            pl.BlockSpec((tm2, Cp), lambda i: (i, 0)),
            pl.BlockSpec((1, Cp), lambda i: (0, 0)),
            pl.BlockSpec((1, Cp), lambda i: (0, 0)),
        ],
        out_specs=pl.BlockSpec((tm2, Cp), lambda i: (i, 0)),
        compiler_params=pltpu.CompilerParams(
            dimension_semantics=("parallel",),
            vmem_limit_bytes=vmem_limit),
    )(y_flat, scale.reshape(1, Cp), shift.reshape(1, Cp))

    out = out_flat[:M, :Cout].reshape(N, Hout, Wout, Cout)
    if return_nhwc:                     # chained blocks: skip the transpose
        return out
    return out.transpose(0, 3, 1, 2)    # PyTorch-facing NCHW


def conv_block_forward(x_nchw, weight, bias, gamma, beta,
                       kernel_size=3, padding=1, tile_m=512,
                       return_nhwc=False):
    """Forward of Conv2d(+bias) -> BatchNorm2d(train) -> ReLU.

    x_nchw: (N, Cin, H, W), weight: (Cout, Cin, kH, kW), bias/gamma/beta: (Cout,)
    `bias` is accepted for interface parity but unused: training-mode BN's
    batch-mean subtraction cancels the conv bias exactly.
    """
    del bias  # mathematically a no-op before training-mode BatchNorm

    N, Cin, H, W = x_nchw.shape
    Cout = weight.shape[0]
    K = kernel_size
    Hout = H + 2 * padding - K + 1
    Wout = W + 2 * padding - K + 1
    M = N * Hout * Wout
    Kd = Cin * K * K
    plan = _plan(M, Kd, Cout, tile_m)
    return _conv_block_impl(x_nchw, weight, gamma, beta,
                            K=K, padding=padding, return_nhwc=return_nhwc,
                            **plan)


def _reference(x, weight, bias, gamma, beta, padding):
    """Pure-JAX reference: Conv2d(+bias) -> BatchNorm2d(train) -> ReLU."""
    y = jax.lax.conv_general_dilated(
        x, weight, window_strides=(1, 1),
        padding=[(padding, padding), (padding, padding)],
        dimension_numbers=("NCHW", "OIHW", "NCHW"))
    y = y + bias[None, :, None, None]
    mean = jnp.mean(y, axis=(0, 2, 3), keepdims=True)
    var = jnp.mean((y - mean) ** 2, axis=(0, 2, 3), keepdims=True)
    y = (y - mean) * jax.lax.rsqrt(var + 1e-5)
    y = y * gamma[None, :, None, None] + beta[None, :, None, None]
    return jnp.maximum(y, 0.0)


if __name__ == "__main__":
    key = jax.random.PRNGKey(0)
    k_x, k_w, k_b = jax.random.split(key, 3)

    # small shapes consistent with the module
    N, Cin, H, W = 2, 4, 16, 16
    Cout, K, pad = 8, 3, 1

    x = jax.random.normal(k_x, (N, Cin, H, W), dtype=jnp.float32)

    # PyTorch-style init: uniform(-1/sqrt(fan_in), 1/sqrt(fan_in))
    fan_in = Cin * K * K
    bound = 1.0 / (fan_in ** 0.5)
    weight = jax.random.uniform(k_w, (Cout, Cin, K, K),
                                minval=-bound, maxval=bound, dtype=jnp.float32)
    bias = jax.random.uniform(k_b, (Cout,),
                              minval=-bound, maxval=bound, dtype=jnp.float32)
    gamma = jnp.ones((Cout,), jnp.float32)   # BatchNorm2d default weight
    beta = jnp.zeros((Cout,), jnp.float32)   # BatchNorm2d default bias

    out = conv_block_forward(x, weight, bias, gamma, beta,
                             kernel_size=K, padding=pad)
    jax.block_until_ready(out)

    assert out.shape == (N, Cout, H, W), out.shape
    assert bool(jnp.all(out >= 0.0))  # ReLU post-condition

    ref = _reference(x, weight, bias, gamma, beta, pad)
    max_diff = float(jnp.max(jnp.abs(out - ref)))
    assert max_diff < 5e-2, f"max_diff={max_diff}"  # bf16-MXU tolerance

    print("KERNEL_OK")
</pallas_src>

<mosaic_0001>
module attributes {stable_mosaic.version = 11 : i64} {
  func.func @_matmul_stats_kernel(%arg0: i32, %arg1: i32, %arg2: memref<256x128xbf16, #tpu.memory_space<vmem>>, %arg3: memref<128x128xbf16, #tpu.memory_space<vmem>>, %arg4: memref<256x128xbf16, #tpu.memory_space<vmem>>, %arg5: memref<1x8x128xf32, #tpu.memory_space<vmem>>, %arg6: memref<1x8x128xf32, #tpu.memory_space<vmem>>, %arg7: memref<256x128xf32, #tpu.memory_space<vmem>>) attributes {dimension_semantics = [#tpu.dimension_semantics<parallel>, #tpu.dimension_semantics<arbitrary>], iteration_bounds = array<i64: 2, 1>, scalar_prefetch = 0 : i64, scratch_operands = 1 : i64, tpu.core_type = #tpu.core_type<tc>, window_params = [{transform_indices = @transform_0, window_bounds = array<i64: 256, 128>}, {transform_indices = @transform_1, window_bounds = array<i64: 128, 128>}, {transform_indices = @transform_2, window_bounds = array<i64: 256, 128>}, {transform_indices = @transform_3, window_bounds = array<i64: 1, 8, 128>}, {transform_indices = @transform_4, window_bounds = array<i64: 1, 8, 128>}]} {
    %c0_i32 = arith.constant 0 : i32
    %0 = arith.cmpi eq, %arg1, %c0_i32 : i32
    %1 = arith.extui %0 : i1 to i32
    %c0_i32_0 = arith.constant 0 : i32
    %2 = arith.cmpi ne, %1, %c0_i32_0 : i32
    scf.if %2 {
      %cst_10 = arith.constant 0.000000e+00 : f32
      %12 = vector.broadcast %cst_10 : f32 to vector<256x128xf32>
      %c0_11 = arith.constant 0 : index
      %c0_12 = arith.constant 0 : index
      %13 = vector.load %arg7[%c0_11, %c0_12] : memref<256x128xf32, #tpu.memory_space<vmem>>, vector<256x128xf32>
      tpu.vector_store %arg7[%c0_11, %c0_12], %12 {strides = array<i32>} : memref<256x128xf32, #tpu.memory_space<vmem>>, vector<256x128xf32>,
    } else {
    }
    %c0 = arith.constant 0 : index
    %c0_1 = arith.constant 0 : index
    %3 = vector.load %arg7[%c0, %c0_1] : memref<256x128xf32, #tpu.memory_space<vmem>>, vector<256x128xf32>
    %c0_2 = arith.constant 0 : index
    %c0_3 = arith.constant 0 : index
    %4 = vector.load %arg2[%c0_2, %c0_3] : memref<256x128xbf16, #tpu.memory_space<vmem>>, vector<256x128xbf16>
    %c0_4 = arith.constant 0 : index
    %c0_5 = arith.constant 0 : index
    %5 = vector.load %arg3[%c0_4, %c0_5] : memref<128x128xbf16, #tpu.memory_space<vmem>>, vector<128x128xbf16>
    %cst = arith.constant dense<0.000000e+00> : vector<256x128xf32>
    %6 = tpu.matmul %4, %5, %cst {dimension_numbers = #tpu.dot_dimension_numbers<[1], [0], [0], [1], [0, 0, 1, 1], [], []>} : vector<256x128xbf16>, vector<128x128xbf16>, vector<256x128xf32> -> vector<256x128xf32>
    %7 = arith.addf %3, %6 : vector<256x128xf32>
    %c0_6 = arith.constant 0 : index
    %c0_7 = arith.constant 0 : index
    %8 = vector.load %arg7[%c0_6, %c0_7] : memref<256x128xf32, #tpu.memory_space<vmem>>, vector<256x128xf32>
    tpu.vector_store %arg7[%c0_6, %c0_7], %7 {strides = array<i32>} : memref<256x128xf32, #tpu.memory_space<vmem>>, vector<256x128xf32>,
    %c0_i32_8 = arith.constant 0 : i32
    %9 = arith.cmpi eq, %arg1, %c0_i32_8 : i32
    %10 = arith.extui %9 : i1 to i32
    %c0_i32_9 = arith.constant 0 : i32
    %11 = arith.cmpi ne, %10, %c0_i32_9 : i32
    scf.if %11 {
      %c0_10 = arith.constant 0 : index
      %c0_11 = arith.constant 0 : index
      %12 = vector.load %arg7[%c0_10, %c0_11] : memref<256x128xf32, #tpu.memory_space<vmem>>, vector<256x128xf32>
      %13 = vector.shape_cast %12 : vector<256x128xf32> to vector<32x8x128xf32>
      %cst_12 = arith.constant dense<0.000000e+00> : vector<8x128xf32>
      %14 = vector.multi_reduction <add>, %13, %cst_12 [0] : vector<32x8x128xf32> to vector<8x128xf32>
      %15 = vector.shape_cast %14 : vector<8x128xf32> to vector<1x8x128xf32>
      %c0_13 = arith.constant 0 : index
      %c0_14 = arith.constant 0 : index
      %c0_15 = arith.constant 0 : index
      %16 = vector.load %arg5[%c0_13, %c0_14, %c0_15] : memref<1x8x128xf32, #tpu.memory_space<vmem>>, vector<1x8x128xf32>
      tpu.vector_store %arg5[%c0_13, %c0_14, %c0_15], %15 {strides = array<i32>} : memref<1x8x128xf32, #tpu.memory_space<vmem>>, vector<1x8x128xf32>,
      %17 = arith.mulf %13, %13 : vector<32x8x128xf32>
      %cst_16 = arith.constant dense<0.000000e+00> : vector<8x128xf32>
      %18 = vector.multi_reduction <add>, %17, %cst_16 [0] : vector<32x8x128xf32> to vector<8x128xf32>
      %19 = vector.shape_cast %18 : vector<8x128xf32> to vector<1x8x128xf32>
      %c0_17 = arith.constant 0 : index
      %c0_18 = arith.constant 0 : index
      %c0_19 = arith.constant 0 : index
      %20 = vector.load %arg6[%c0_17, %c0_18, %c0_19] : memref<1x8x128xf32, #tpu.memory_space<vmem>>, vector<1x8x128xf32>
      tpu.vector_store %arg6[%c0_17, %c0_18, %c0_19], %19 {strides = array<i32>} : memref<1x8x128xf32, #tpu.memory_space<vmem>>, vector<1x8x128xf32>,
      %21 = arith.truncf %12 : vector<256x128xf32> to vector<256x128xbf16>
      %c0_20 = arith.constant 0 : index
      %c0_21 = arith.constant 0 : index
      %22 = vector.load %arg4[%c0_20, %c0_21] : memref<256x128xbf16, #tpu.memory_space<vmem>>, vector<256x128xbf16>
      tpu.vector_store %arg4[%c0_20, %c0_21], %21 {strides = array<i32>} : memref<256x128xbf16, #tpu.memory_space<vmem>>, vector<256x128xbf16>,
    } else {
    }
    return
  }
  func.func @transform_0(%arg0: i32, %arg1: i32) -> (i32, i32) {
    %c0_i32 = arith.constant 0 : i32
    return %arg0, %arg1 : i32, i32
  }
  func.func @transform_1(%arg0: i32, %arg1: i32) -> (i32, i32) {
    %c0_i32 = arith.constant 0 : i32
    %c0_i32_0 = arith.constant 0 : i32
    return %arg1, %c0_i32 : i32, i32
  }
  func.func @transform_2(%arg0: i32, %arg1: i32) -> (i32, i32) {
    %c0_i32 = arith.constant 0 : i32
    %c0_i32_0 = arith.constant 0 : i32
    return %arg0, %c0_i32 : i32, i32
  }
  func.func @transform_3(%arg0: i32, %arg1: i32) -> (i32, i32, i32) {
    %c0_i32 = arith.constant 0 : i32
    %c0_i32_0 = arith.constant 0 : i32
    %c0_i32_1 = arith.constant 0 : i32
    return %arg0, %c0_i32, %c0_i32_0 : i32, i32, i32
  }
  func.func @transform_4(%arg0: i32, %arg1: i32) -> (i32, i32, i32) {
    %c0_i32 = arith.constant 0 : i32
    %c0_i32_0 = arith.constant 0 : i32
    %c0_i32_1 = arith.constant 0 : i32
    return %arg0, %c0_i32, %c0_i32_0 : i32, i32, i32
  }
}

module attributes {stable_mosaic.version = 11 : i64} {
  func.func @_bn_relu_kernel(%arg0: i32, %arg1: memref<256x128xbf16, #tpu.memory_space<vmem>>, %arg2: memref<1x128xf32, #tpu.memory_space<vmem>>, %arg3: memref<1x128xf32, #tpu.memory_space<vmem>>, %arg4: memref<256x128xf32, #tpu.memory_space<vmem>>) attributes {dimension_semantics = [#tpu.dimension_semantics<parallel>], iteration_bounds = array<i64: 2>, scalar_prefetch = 0 : i64, scratch_operands = 0 : i64, tpu.core_type = #tpu.core_type<tc>, window_params = [{transform_indices = @transform_0, window_bounds = array<i64: 256, 128>}, {pipeline_mode = #tpu.pipeline_mode<synchronous>, transform_indices = @transform_1, window_bounds = array<i64: 1, 128>}, {pipeline_mode = #tpu.pipeline_mode<synchronous>, transform_indices = @transform_2, window_bounds = array<i64: 1, 128>}, {transform_indices = @transform_3, window_bounds = array<i64: 256, 128>}]} {
    %c0 = arith.constant 0 : index
    %c0_0 = arith.constant 0 : index
    %0 = vector.load %arg1[%c0, %c0_0] : memref<256x128xbf16, #tpu.memory_space<vmem>>, vector<256x128xbf16>
    %1 = arith.extf %0 : vector<256x128xbf16> to vector<256x128xf32>
    %c0_1 = arith.constant 0 : index
    %c0_2 = arith.constant 0 : index
    %2 = vector.load %arg2[%c0_1, %c0_2] : memref<1x128xf32, #tpu.memory_space<vmem>>, vector<1x128xf32>
    %3 = vector.broadcast %2 : vector<1x128xf32> to vector<256x128xf32>
    %4 = arith.mulf %1, %3 : vector<256x128xf32>
    %c0_3 = arith.constant 0 : index
    %c0_4 = arith.constant 0 : index
    %5 = vector.load %arg3[%c0_3, %c0_4] : memref<1x128xf32, #tpu.memory_space<vmem>>, vector<1x128xf32>
    %6 = vector.broadcast %5 : vector<1x128xf32> to vector<256x128xf32>
    %7 = arith.addf %4, %6 : vector<256x128xf32>
    %cst = arith.constant 0.000000e+00 : f32
    %8 = vector.broadcast %cst : f32 to vector<256x128xf32>
    %9 = arith.maximumf %7, %8 : vector<256x128xf32>
    %c0_5 = arith.constant 0 : index
    %c0_6 = arith.constant 0 : index
    %10 = vector.load %arg4[%c0_5, %c0_6] : memref<256x128xf32, #tpu.memory_space<vmem>>, vector<256x128xf32>
    tpu.vector_store %arg4[%c0_5, %c0_6], %9 {strides = array<i32>} : memref<256x128xf32, #tpu.memory_space<vmem>>, vector<256x128xf32>,
    return
  }
  func.func @transform_0(%arg0: i32) -> (i32, i32) {
    %c0_i32 = arith.constant 0 : i32
    %c0_i32_0 = arith.constant 0 : i32
    return %arg0, %c0_i32 : i32, i32
  }
  func.func @transform_1(%arg0: i32) -> (i32, i32) {
    %c0_i32 = arith.constant 0 : i32
    %c0_i32_0 = arith.constant 0 : i32
    %c0_i32_1 = arith.constant 0 : i32
    return %c0_i32, %c0_i32_0 : i32, i32
  }
  func.func @transform_2(%arg0: i32) -> (i32, i32) {
    %c0_i32 = arith.constant 0 : i32
    %c0_i32_0 = arith.constant 0 : i32
    %c0_i32_1 = arith.constant 0 : i32
    return %c0_i32, %c0_i32_0 : i32, i32
  }
  func.func @transform_3(%arg0: i32) -> (i32, i32) {
    %c0_i32 = arith.constant 0 : i32
    %c0_i32_0 = arith.constant 0 : i32
    return %arg0, %c0_i32 : i32, i32
  }
}

</mosaic_0001>

<bundles_post_ra>
// kernel: _conv_block_impl.3
= control target key start
LH: loop header
LB: loop body
LE: loop exit
PB: predicated region body
PF: predicated region fallthrough
CT: control target
= control target key end

     0   :  { %s564_s12 = smov 0   ;;  %s711_s0 = inlined_call_operand.vmem [shape: bf16[512,128], index: 0, kind: input, shape index: {}]   ;;  %s712_s1 = inlined_call_operand.vmem [shape: f32[1,128], index: 1, kind: input, shape index: {}]   ;;  %s713_s2 = inlined_call_operand.vmem [shape: f32[1,128], index: 2, kind: input, shape index: {}]   ;;  %s714_s3 = inlined_call_operand.vmem [shape: f32[512,128], index: 3, kind: output, shape index: {}]  }
   0x1 LB: > { %s436_s13 = sadd.s32 4294967295, %s542_s12   ;;  %p440_p0 = scmp.ge.s32.totalorder %s542_s12, 1  ;;  %s542_s12 = sphi %s564_s12, %s13_s12  }
   0x2   : > { %p138_p1 = scmp.lt.s32.totalorder %s542_s12, 3 }
   0x4   : > { %p139_p2 = pnand %p440_p0, %p138_p1 }
   0x5   : > { %s441_s14 = sshll.u32 (!%p139_p2), %s436_s13, 5 }
   0x6   : > { %142 = sbr.rel (%p139_p2) target bundleno = 51 (0x33), region = 32  ;;  %p163_p3 = scmp.lt.s32.totalorder (!%p139_p2), %s441_s14, 63 }
   0xb   : > { %s716_s14 = smov (!%p163_p3, %s441_s14), 63  ;;  %v583_v0 = vld [vmem:[%s712_s1] ss:$0 sm:$0xff] }
   0xc   : > { %s442_s15 = sshll.u32 %s716_s14, 2  ;;  %v592_v9 = vld [vmem:[%s713_s2] ss:$0 sm:$0xff]  ;;  %s444_s23 = sshll.u32 %s716_s14, 3 }
   0xd   : > { %s578_s18 = scalar_lea.vmem %s711_s0, %s442_s15  ;;  %s610_s26 = scalar_lea.vmem %s714_s3, %s444_s23 }
   0xe   : > { %v450_v1 = vld [vmem:[%s578_s18] sm:$0xff]   ;;  %v513_v2 = vld [vmem:[%s578_s18 + $0x8] sm:$0xff]   ;;  %v514_v3 = vld [vmem:[%s578_s18 + $0x10] sm:$0xff]  }
   0xf   : > { %v451_v4 = vunpack.c.l.bf16 %v450_v1  ;;  %v452_v5 = vunpack.c.h.bf16 %v450_v1  ;;  %v455_v6 = vunpack.c.l.bf16 %v513_v2  ;;  %v456_v7 = vunpack.c.h.bf16 %v513_v2  ;;  %v515_v8 = vld [vmem:[%s578_s18 + $0x18] sm:$0xff]   ;;  %v516_v30 = vld [vmem:[%s578_s18 + $0x20] sm:$0xff]   ;;  %v517_v31 = vld [vmem:[%s578_s18 + $0x28] sm:$0xff]  }
  0x10   : > { %v459_v10 = vunpack.c.l.bf16 %v514_v3  ;;  %v460_v11 = vunpack.c.h.bf16 %v514_v3  ;;  %v463_v12 = vunpack.c.l.bf16 %v515_v8  ;;  %v464_v13 = vunpack.c.h.bf16 %v515_v8  ;;  %v518_v36 = vld [vmem:[%s578_s18 + $0x30] sm:$0xff]   ;;  %v519_v37 = vld [vmem:[%s578_s18 + $0x38] sm:$0xff]   ;;  %v520_v3 = vld [vmem:[%s578_s18 + $0x40] sm:$0xff]  }
  0x11   : > { %v245_v14 = vmul.f32 %v451_v4, %v583_v0  ;;  %v246_v15 = vmul.f32 %v452_v5, %v583_v0  ;;  %v247_v16 = vmul.f32 %v455_v6, %v583_v0  ;;  %v248_v17 = vmul.f32 %v456_v7, %v583_v0  ;;  %v521_v4 = vld [vmem:[%s578_s18 + $0x48] sm:$0xff]  }
  0x12   : > { %v249_v18 = vmul.f32 %v459_v10, %v583_v0  ;;  %v250_v19 = vmul.f32 %v460_v11, %v583_v0  ;;  %v251_v20 = vmul.f32 %v463_v12, %v583_v0  ;;  %v252_v21 = vmul.f32 %v464_v13, %v583_v0  ;;  %v522_v10 = vld [vmem:[%s578_s18 + $0x50] sm:$0xff]   ;;  %v523_v11 = vld [vmem:[%s578_s18 + $0x58] sm:$0xff]  }
  0x13   : > { %v284_v22 = vadd.f32 %v592_v9, %v245_v14  ;;  %v285_v23 = vadd.f32 %v592_v9, %v246_v15  ;;  %v286_v24 = vadd.f32 %v592_v9, %v247_v16  ;;  %v287_v25 = vadd.f32 %v592_v9, %v248_v17 }
  0x14   : > { %v288_v26 = vadd.f32 %v592_v9, %v249_v18  ;;  %v289_v27 = vadd.f32 %v592_v9, %v250_v19  ;;  %v290_v28 = vadd.f32 %v592_v9, %v251_v20  ;;  %v291_v29 = vadd.f32 %v592_v9, %v252_v21 }
  0x15   : > { %v316_v32 = vmax.f32 %v284_v22, 0.0  ;;  %v317_v33 = vmax.f32 %v285_v23, 0.0  ;;  %v318_v34 = vmax.f32 %v286_v24, 0.0  ;;  %v319_v35 = vmax.f32 %v287_v25, 0.0 }
  0x16   : > { %v320_v38 = vmax.f32 %v288_v26, 0.0  ;;  %v321_v39 = vmax.f32 %v289_v27, 0.0  ;;  %v322_v40 = vmax.f32 %v290_v28, 0.0  ;;  %v323_v41 = vmax.f32 %v291_v29, 0.0 }
  0x17   : > { %348 = vst [vmem:[%s610_s26] sm:$0xff] %v316_v32  ;;  %349 = vst [vmem:[%s610_s26 + $0x8] sm:$0xff] %v317_v33  ;;  %v467_v42 = vunpack.c.l.bf16 %v516_v30  ;;  %v468_v43 = vunpack.c.h.bf16 %v516_v30  ;;  %v471_v44 = vunpack.c.l.bf16 %v517_v31  ;;  %v472_v45 = vunpack.c.h.bf16 %v517_v31 }
  0x18   : > { %350 = vst [vmem:[%s610_s26 + $0x10] sm:$0xff] %v318_v34  ;;  %351 = vst [vmem:[%s610_s26 + $0x18] sm:$0xff] %v319_v35  ;;  %v475_v46 = vunpack.c.l.bf16 %v518_v36  ;;  %v476_v47 = vunpack.c.h.bf16 %v518_v36  ;;  %v479_v48 = vunpack.c.l.bf16 %v519_v37  ;;  %v480_v49 = vunpack.c.h.bf16 %v519_v37 }
  0x19   : > { %352 = vst [vmem:[%s610_s26 + $0x20] sm:$0xff] %v320_v38  ;;  %353 = vst [vmem:[%s610_s26 + $0x28] sm:$0xff] %v321_v39  ;;  %v253_v50 = vmul.f32 %v467_v42, %v583_v0  ;;  %v254_v51 = vmul.f32 %v468_v43, %v583_v0  ;;  %v255_v52 = vmul.f32 %v471_v44, %v583_v0  ;;  %v483_v16 = vunpack.c.l.bf16 %v520_v3 }
  0x1a   : > { %354 = vst [vmem:[%s610_s26 + $0x30] sm:$0xff] %v322_v40  ;;  %355 = vst [vmem:[%s610_s26 + $0x38] sm:$0xff] %v323_v41  ;;  %v256_v53 = vmul.f32 %v472_v45, %v583_v0  ;;  %v257_v54 = vmul.f32 %v475_v46, %v583_v0  ;;  %v258_v55 = vmul.f32 %v476_v47, %v583_v0  ;;  %v484_v17 = vunpack.c.h.bf16 %v520_v3  ;;  %v524_v40 = vld [vmem:[%s578_s18 + $0x60] sm:$0xff]   ;;  %v525_v41 = vld [vmem:[%s578_s18 + $0x68] sm:$0xff]  }
  0x1b   : > { %v259_v56 = vmul.f32 %v479_v48, %v583_v0  ;;  %v260_v57 = vmul.f32 %v480_v49, %v583_v0  ;;  %v292_v58 = vadd.f32 %v592_v9, %v253_v50  ;;  %v293_v59 = vadd.f32 %v592_v9, %v254_v51  ;;  %v526_v46 = vld [vmem:[%s578_s18 + $0x70] sm:$0xff]   ;;  %v527_v47 = vld [vmem:[%s578_s18 + $0x78] sm:$0xff]  }
  0x1c   : > { %v294_v60 = vadd.f32 %v592_v9, %v255_v52  ;;  %v295_v61 = vadd.f32 %v592_v9, %v256_v53  ;;  %v296_v62 = vadd.f32 %v592_v9, %v257_v54  ;;  %v297_v63 = vadd.f32 %v592_v9, %v258_v55 }
  0x1d   : > { %v298_v1 = vadd.f32 %v592_v9, %v259_v56  ;;  %v299_v2 = vadd.f32 %v592_v9, %v260_v57  ;;  %v324_v5 = vmax.f32 %v292_v58, 0.0  ;;  %v325_v6 = vmax.f32 %v293_v59, 0.0 }
  0x1e   : > { %v326_v7 = vmax.f32 %v294_v60, 0.0  ;;  %v327_v8 = vmax.f32 %v295_v61, 0.0  ;;  %v328_v12 = vmax.f32 %v296_v62, 0.0  ;;  %v329_v13 = vmax.f32 %v297_v63, 0.0 }
  0x1f   : > { %v330_v14 = vmax.f32 %v298_v1, 0.0  ;;  %v331_v15 = vmax.f32 %v299_v2, 0.0  ;;  %356 = vst [vmem:[%s610_s26 + $0x40] sm:$0xff] %v324_v5  ;;  %357 = vst [vmem:[%s610_s26 + $0x48] sm:$0xff] %v325_v6  ;;  %v487_v18 = vunpack.c.l.bf16 %v521_v4  ;;  %v488_v19 = vunpack.c.h.bf16 %v521_v4 }
  0x20   : > { %358 = vst [vmem:[%s610_s26 + $0x50] sm:$0xff] %v326_v7  ;;  %359 = vst [vmem:[%s610_s26 + $0x58] sm:$0xff] %v327_v8  ;;  %v491_v20 = vunpack.c.l.bf16 %v522_v10  ;;  %v492_v21 = vunpack.c.h.bf16 %v522_v10  ;;  %v495_v22 = vunpack.c.l.bf16 %v523_v11  ;;  %v496_v23 = vunpack.c.h.bf16 %v523_v11 }
  0x21   : > { %360 = vst [vmem:[%s610_s26 + $0x60] sm:$0xff] %v328_v12  ;;  %361 = vst [vmem:[%s610_s26 + $0x68] sm:$0xff] %v329_v13  ;;  %v261_v24 = vmul.f32 %v483_v16, %v583_v0  ;;  %v262_v25 = vmul.f32 %v484_v17, %v583_v0  ;;  %v263_v26 = vmul.f32 %v487_v18, %v583_v0  ;;  %v499_v52 = vunpack.c.l.bf16 %v524_v40 }
  0x22   : > { %362 = vst [vmem:[%s610_s26 + $0x70] sm:$0xff] %v330_v14  ;;  %363 = vst [vmem:[%s610_s26 + $0x78] sm:$0xff] %v331_v15  ;;  %v264_v27 = vmul.f32 %v488_v19, %v583_v0  ;;  %v265_v28 = vmul.f32 %v491_v20, %v583_v0  ;;  %v266_v29 = vmul.f32 %v492_v21, %v583_v0  ;;  %v500_v53 = vunpack.c.h.bf16 %v524_v40 }
  0x23   : > { %v267_v30 = vmul.f32 %v495_v22, %v583_v0  ;;  %v268_v31 = vmul.f32 %v496_v23, %v583_v0  ;;  %v300_v32 = vadd.f32 %v592_v9, %v261_v24  ;;  %v301_v33 = vadd.f32 %v592_v9, %v262_v25 }
  0x24   : > { %v302_v34 = vadd.f32 %v592_v9, %v263_v26  ;;  %v303_v35 = vadd.f32 %v592_v9, %v264_v27  ;;  %v304_v36 = vadd.f32 %v592_v9, %v265_v28  ;;  %v305_v37 = vadd.f32 %v592_v9, %v266_v29 }
  0x25   : > { %v306_v38 = vadd.f32 %v592_v9, %v267_v30  ;;  %v307_v39 = vadd.f32 %v592_v9, %v268_v31  ;;  %v332_v42 = vmax.f32 %v300_v32, 0.0  ;;  %v333_v43 = vmax.f32 %v301_v33, 0.0 }
  0x26   : > { %v334_v44 = vmax.f32 %v302_v34, 0.0  ;;  %v335_v45 = vmax.f32 %v303_v35, 0.0  ;;  %v336_v48 = vmax.f32 %v304_v36, 0.0  ;;  %v337_v49 = vmax.f32 %v305_v37, 0.0 }
  0x27   : > { %v338_v50 = vmax.f32 %v306_v38, 0.0  ;;  %v339_v51 = vmax.f32 %v307_v39, 0.0  ;;  %364 = vst [vmem:[%s610_s26 + $0x80] sm:$0xff] %v332_v42  ;;  %365 = vst [vmem:[%s610_s26 + $0x88] sm:$0xff] %v333_v43  ;;  %v503_v54 = vunpack.c.l.bf16 %v525_v41  ;;  %v504_v55 = vunpack.c.h.bf16 %v525_v41 }
  0x28   : > { %366 = vst [vmem:[%s610_s26 + $0x90] sm:$0xff] %v334_v44  ;;  %367 = vst [vmem:[%s610_s26 + $0x98] sm:$0xff] %v335_v45  ;;  %v507_v56 = vunpack.c.l.bf16 %v526_v46  ;;  %v508_v57 = vunpack.c.h.bf16 %v526_v46  ;;  %v511_v58 = vunpack.c.l.bf16 %v527_v47  ;;  %v512_v59 = vunpack.c.h.bf16 %v527_v47 }
  0x29   : > { %368 = vst [vmem:[%s610_s26 + $0xa0] sm:$0xff] %v336_v48  ;;  %369 = vst [vmem:[%s610_s26 + $0xa8] sm:$0xff] %v337_v49  ;;  %v269_v60 = vmul.f32 %v499_v52, %v583_v0  ;;  %v270_v61 = vmul.f32 %v500_v53, %v583_v0  ;;  %v271_v62 = vmul.f32 %v503_v54, %v583_v0 }
  0x2a   : > { %370 = vst [vmem:[%s610_s26 + $0xb0] sm:$0xff] %v338_v50  ;;  %371 = vst [vmem:[%s610_s26 + $0xb8] sm:$0xff] %v339_v51  ;;  %v272_v63 = vmul.f32 %v504_v55, %v583_v0  ;;  %v273_v1 = vmul.f32 %v507_v56, %v583_v0  ;;  %v274_v2 = vmul.f32 %v508_v57, %v583_v0 }
  0x2b   : > { %v275_v3 = vmul.f32 %v511_v58, %v583_v0  ;;  %v276_v4 = vmul.f32 %v512_v59, %v583_v0  ;;  %v308_v5 = vadd.f32 %v592_v9, %v269_v60  ;;  %v309_v6 = vadd.f32 %v592_v9, %v270_v61 }
  0x2c   : > { %v310_v7 = vadd.f32 %v592_v9, %v271_v62  ;;  %v311_v8 = vadd.f32 %v592_v9, %v272_v63  ;;  %v312_v10 = vadd.f32 %v592_v9, %v273_v1  ;;  %v313_v11 = vadd.f32 %v592_v9, %v274_v2 }
  0x2d   : > { %v314_v0 = vadd.f32 %v592_v9, %v275_v3  ;;  %v315_v12 = vadd.f32 %v592_v9, %v276_v4  ;;  %v340_v13 = vmax.f32 %v308_v5, 0.0  ;;  %v341_v14 = vmax.f32 %v309_v6, 0.0 }
  0x2e   : > { %v342_v15 = vmax.f32 %v310_v7, 0.0  ;;  %v343_v16 = vmax.f32 %v311_v8, 0.0  ;;  %v344_v17 = vmax.f32 %v312_v10, 0.0  ;;  %v345_v18 = vmax.f32 %v313_v11, 0.0 }
  0x2f   : > { %v346_v19 = vmax.f32 %v314_v0, 0.0  ;;  %v347_v20 = vmax.f32 %v315_v12, 0.0  ;;  %372 = vst [vmem:[%s610_s26 + $0xc0] sm:$0xff] %v340_v13  ;;  %373 = vst [vmem:[%s610_s26 + $0xc8] sm:$0xff] %v341_v14 }
  0x30   : > { %374 = vst [vmem:[%s610_s26 + $0xd0] sm:$0xff] %v342_v15  ;;  %375 = vst [vmem:[%s610_s26 + $0xd8] sm:$0xff] %v343_v16 }
  0x31   : > { %376 = vst [vmem:[%s610_s26 + $0xe0] sm:$0xff] %v344_v17  ;;  %377 = vst [vmem:[%s610_s26 + $0xe8] sm:$0xff] %v345_v18 }
  0x32   : > { %378 = vst [vmem:[%s610_s26 + $0xf0] sm:$0xff] %v346_v19  ;;  %379 = vst [vmem:[%s610_s26 + $0xf8] sm:$0xff] %v347_v20 }
  0x33 PF: > { %s13_s12 = sadd.s32 1, %s542_s12  }
  0x34   : > { %p10_p4 = scmp.ge.s32.totalorder %s13_s12, 4  }
  0x36   :  { %12 = sbr.rel (!%p10_p4) target bundleno = 1 (0x1), region = 62 }

// kernel: _conv_block_impl.2
= control target key start
LH: loop header
LB: loop body
LE: loop exit
PB: predicated region body
PF: predicated region fallthrough
CT: control target
= control target key end

     0   :  { %s1571_s15 = smov 0   ;;  %s1573_s16 = smov 0   ;;  %s1772_s0 = inlined_call_operand.vmem [shape: bf16[512,128], index: 0, kind: input, shape index: {}]   ;;  %s1773_s1 = inlined_call_operand.vmem [shape: bf16[128,128], index: 1, kind: input, shape index: {}]   ;;  %s1774_s2 = inlined_call_operand.vmem [shape: bf16[512,128], index: 2, kind: output, shape index: {0}]   ;;  %s1775_s3 = inlined_call_operand.vmem [shape: f32[2,8,128], index: 3, kind: output, shape index: {1}]   ;;  %s1776_s4 = inlined_call_operand.vmem [shape: f32[2,8,128], index: 4, kind: output, shape index: {2}]  }
   0x1   :  { %s1575_s17 = smov 0  }
   0x2 LB: > { %s27_s18 = sadd.s32 1, %s1540_s16  ;;  %p1194_p0 = scmp.ge.s32.totalorder %s1544_s17, 1  ;;  %s1544_s17 = sphi %s1575_s17, %s15_s17   ;;  %s1540_s16 = sphi %s1573_s16, %s1778_s16   ;;  %s1536_s15 = sphi %s1571_s15, %s1777_s15  }
   0x3   : > { %p29_p1 = scmp.ge.s32.totalorder %s27_s18, 2  ;;  %p196_p2 = scmp.lt.s32.totalorder %s1544_s17, 3 }
   0x5   : > { %s1780_s18 = smov (%p29_p1, %s27_s18), 0  ;;  %p197_p3 = pnand %p1194_p0, %p196_p2 }
   0x6   : > { %s1195_s21 = sshll.u32 (!%p197_p3), %s1536_s15, 5  ;;  %p259_p5 = scmp.lt.s32.totalorder (!%p197_p3), %s1536_s15, 1 }
   0x7   : > { %200 = sbr.rel (%p197_p3) target bundleno = 309 (0x135), region = 28  ;;  %p239_p4 = scmp.lt.s32.totalorder (!%p197_p3), %s1195_s21, 63 }
   0xc   : > { %v1498_v0 = vld [vmem:[%s1773_s1 + $0x38] sm:$0xff]   ;;  %v1499_v1 = vld [vmem:[%s1773_s1 + $0x30] sm:$0xff]   ;;  %s1782_s21 = smov (!%p239_p4, %s1195_s21), 63  ;;  %v1500_v2 = vld [vmem:[%s1773_s1 + $0x28] sm:$0xff]   ;;  %s1784_s15 = smov (!%p259_p5, %s1536_s15), 1 }
   0xd   : > { %1410 = vmatprep.subr.bf16.mxu0 %v1498_v0  ;;  %1458 = vmatprep.subr.bf16.mxu1 %v1498_v0  ;;  %s1196_s26 = sshll.u32 %s1782_s21, 2  ;;  %v1501_v3 = vld [vmem:[%s1773_s1 + $0x20] sm:$0xff]   ;;  %v1502_v5 = vld [vmem:[%s1773_s1 + $0x18] sm:$0xff]   ;;  %v1503_v6 = vld [vmem:[%s1773_s1 + $0x10] sm:$0xff]   ;;  %s1199_s21 = sshll.u32 %s1784_s15, 3 }
   0xe   : > { %1411 = vmatpush3.bf16.msra.mxu0 %v1498_v0  ;;  %1466 = vmatpush3.bf16.msra.mxu1 %v1498_v0  ;;  %s1609_s29 = scalar_lea.vmem %s1772_s0, %s1196_s26  ;;  %v1504_v8 = vld [vmem:[%s1773_s1 + $0x8] sm:$0xff]   ;;  %v1505_v9 = vld [vmem:[%s1773_s1] sm:$0xff]   ;;  %s1651_s20 = scalar_lea.vmem %s1774_s2, %s1196_s26 }
   0xf   : > { %1412 = vmatprep.subr.bf16.mxu0 %v1499_v1  ;;  %1459 = vmatprep.subr.bf16.mxu1 %v1499_v1  ;;  %v1506_v4 = vld [vmem:[%s1609_s29] sm:$0xff]   ;;  %v1507_v10 = vld [vmem:[%s1609_s29 + $0x8] sm:$0xff]   ;;  %v1508_v12 = vld [vmem:[%s1609_s29 + $0x10] sm:$0xff]   ;;  %s262_s24 = scalar_lea.vmem %s1775_s3, %s1199_s21  ;;  %s266_s26 = scalar_lea.vmem %s1776_s4, %s1199_s21 }
  0x10   : > { %1426 = vmatprep.mubr.bf16.mxu0 %v1506_v4  ;;  %v1514_v7 = vld [vmem:[%s1609_s29 + $0x40] sm:$0xff]   ;;  %v1515_v11 = vld [vmem:[%s1609_s29 + $0x48] sm:$0xff]   ;;  %v1516_v13 = vld [vmem:[%s1609_s29 + $0x50] sm:$0xff]  }
  0x11   : > { %1442 = vmatprep.mubr.bf16.mxu1 %v1514_v7  ;;  %v1509_v14 = vld [vmem:[%s1609_s29 + $0x18] sm:$0xff]   ;;  %v1510_v16 = vld [vmem:[%s1609_s29 + $0x20] sm:$0xff]   ;;  %v1511_v18 = vld [vmem:[%s1609_s29 + $0x28] sm:$0xff]  }
  0x12   : > { %1413 = vmatpush3.bf16.msra.mxu0 %v1499_v1  ;;  %1467 = vmatpush3.bf16.msra.mxu1 %v1499_v1  ;;  %v1517_v15 = vld [vmem:[%s1609_s29 + $0x58] sm:$0xff]   ;;  %v1518_v17 = vld [vmem:[%s1609_s29 + $0x60] sm:$0xff]   ;;  %v1519_v19 = vld [vmem:[%s1609_s29 + $0x68] sm:$0xff]  }
  0x13   : > { %1414 = vmatprep.subr.bf16.mxu0 %v1500_v2  ;;  %1460 = vmatprep.subr.bf16.mxu1 %v1500_v2  ;;  %v1512_v20 = vld [vmem:[%s1609_s29 + $0x30] sm:$0xff]   ;;  %v1513_v22 = vld [vmem:[%s1609_s29 + $0x38] sm:$0xff]  }
  0x14   : > { %v1520_v21 = vld [vmem:[%s1609_s29 + $0x70] sm:$0xff]   ;;  %v1521_v23 = vld [vmem:[%s1609_s29 + $0x78] sm:$0xff]  }
  0x16   : > { %1415 = vmatpush3.bf16.msra.mxu0 %v1500_v2  ;;  %1468 = vmatpush3.bf16.msra.mxu1 %v1500_v2 }
  0x17   : > { %1416 = vmatprep.subr.bf16.mxu0 %v1501_v3  ;;  %1461 = vmatprep.subr.bf16.mxu1 %v1501_v3 }
  0x1a   : > { %1417 = vmatpush3.bf16.msra.mxu0 %v1501_v3  ;;  %1469 = vmatpush3.bf16.msra.mxu1 %v1501_v3 }
  0x1b   : > { %1418 = vmatprep.subr.bf16.mxu0 %v1502_v5  ;;  %1462 = vmatprep.subr.bf16.mxu1 %v1502_v5 }
  0x1e   : > { %1419 = vmatpush3.bf16.msra.mxu0 %v1502_v5  ;;  %1470 = vmatpush3.bf16.msra.mxu1 %v1502_v5 }
  0x1f   : > { %1420 = vmatprep.subr.bf16.mxu0 %v1503_v6  ;;  %1463 = vmatprep.subr.bf16.mxu1 %v1503_v6 }
  0x22   : > { %1421 = vmatpush3.bf16.msra.mxu0 %v1503_v6  ;;  %1471 = vmatpush3.bf16.msra.mxu1 %v1503_v6 }
  0x23   : > { %1422 = vmatprep.subr.bf16.mxu0 %v1504_v8  ;;  %1464 = vmatprep.subr.bf16.mxu1 %v1504_v8 }
  0x26   : > { %1423 = vmatpush3.bf16.msra.mxu0 %v1504_v8  ;;  %1472 = vmatpush3.bf16.msra.mxu1 %v1504_v8 }
  0x27   : > { %1424 = vmatprep.subr.bf16.mxu0 %v1505_v9  ;;  %1465 = vmatprep.subr.bf16.mxu1 %v1505_v9 }
  0x2a   : > { %1425 = vmatpush3.bf16.msra.mxu0 %v1505_v9  ;;  %1473 = vmatpush3.bf16.msra.mxu1 %v1505_v9 }
  0x2d   : > { %1427 = vmatmul.mubr.bf16.vlgmr.msra.gmra.mxu0 %v1507_v10  ;;  %1443 = vmatmul.mubr.bf16.vlgmr.msra.gmra.mxu1 %v1515_v11 }
  0x2e   : > { %1430 = vmatprep.mubr.bf16.mxu0 %v1508_v12  ;;  %1446 = vmatprep.mubr.bf16.mxu1 %v1516_v13 }
  0x35   : > { %1431 = vmatmul.mubr.bf16.gmra.mxu0 %v1509_v14  ;;  %1447 = vmatmul.mubr.bf16.gmra.mxu1 %v1517_v15 }
  0x36   : > { %1434 = vmatprep.mubr.bf16.mxu0 %v1510_v16  ;;  %1450 = vmatprep.mubr.bf16.mxu1 %v1518_v17 }
  0x3d   : > { %1435 = vmatmul.mubr.bf16.gmra.mxu0 %v1511_v18  ;;  %1451 = vmatmul.mubr.bf16.gmra.mxu1 %v1519_v19 }
  0x3e   : > { %1438 = vmatprep.mubr.bf16.mxu0 %v1512_v20  ;;  %1454 = vmatprep.mubr.bf16.mxu1 %v1520_v21 }
  0x45   : > { %1439 = vmatmul.mubr.bf16.gmra.mxu0 %v1513_v22  ;;  %1455 = vmatmul.mubr.bf16.gmra.mxu1 %v1521_v23 }
  0xed   : > { %v1428_v24 = vpop.f32.mrf.mxu0  ;;  %v1642_v25 = vpop.f32.mrf.mxu1 }
  0xee   : > { %v822_v41 = vmul.f32 %v1428_v24, %v1428_v24 }
  0xef   : > { %v562_v26 = vpop.f32.mrf.mxu0  ;;  %v1644_v27 = vpop.f32.mrf.mxu1 }
  0xf0   : > { %v820_v34 = vmul.f32 %v562_v26, %v562_v26 }
  0xf1   : > { %v1429_v28 = vpop.f32.mrf.mxu0  ;;  %v1653_v29 = vpop.f32.mrf.mxu1 }
  0xf2   : > { %v1299_v30 = vpack.c.bf16 %v1429_v28, %v1428_v24  ;;  %v1339_v31 = vpack.c.bf16 %v1653_v29, %v1642_v25  ;;  %v823_v46 = vmul.f32 %v1429_v28, %v1429_v28 }
  0xf3   : > { %v565_v32 = vpop.f32.mrf.mxu0  ;;  %v1657_v33 = vpop.f32.mrf.mxu1 }
  0xf4   : > { %1371 = vst [vmem:[%s1651_s20 + $0x8] sm:$0xff] %v1299_v30   ;;  %v788_v35 = vadd.f32 %v565_v32, %v562_v26  ;;  %v821_v36 = vmul.f32 %v565_v32, %v565_v32  ;;  %v1294_v37 = vpack.c.bf16 %v565_v32, %v562_v26  ;;  %1379 = vst [vmem:[%s1651_s20 + $0x48] sm:$0xff] %v1339_v31  }
  0xf5   : > { %v1432_v38 = vpop.f32.mrf.mxu0  ;;  %v1334_v39 = vpack.c.bf16 %v1657_v33, %v1644_v27  ;;  %v1663_v40 = vpop.f32.mrf.mxu1 }
  0xf6   : > { %v789_v42 = vadd.f32 %v1428_v24, %v788_v35  ;;  %v852_v43 = vadd.f32 %v821_v36, %v820_v34  ;;  %1295 = vst [vmem:[%s1651_s20] sm:$0xff] %v1294_v37   ;;  %v826_v1 = vmul.f32 %v1432_v38, %v1432_v38 }
  0xf7   : > { %v578_v44 = vpop.f32.mrf.mxu0  ;;  %1378 = vst [vmem:[%s1651_s20 + $0x40] sm:$0xff] %v1334_v39   ;;  %v1667_v45 = vpop.f32.mrf.mxu1 }
  0xf8   : > { %v853_v47 = vadd.f32 %v852_v43, %v822_v41  ;;  %v790_v48 = vadd.f32 %v1429_v28, %v789_v42  ;;  %v824_v52 = vmul.f32 %v578_v44, %v578_v44 }
  0xf9   : > { %v1433_v49 = vpop.f32.mrf.mxu0  ;;  %v1669_v50 = vpop.f32.mrf.mxu1 }
  0xfa   : > { %v791_v51 = vadd.f32 %v790_v48, %v578_v44  ;;  %v854_v53 = vadd.f32 %v853_v47, %v823_v46  ;;  %v1309_v54 = vpack.c.bf16 %v1433_v49, %v1432_v38  ;;  %v1349_v56 = vpack.c.bf16 %v1669_v50, %v1663_v40 }
  0xfb   : > { %v581_v55 = vpop.f32.mrf.mxu0  ;;  %v1673_v57 = vpop.f32.mrf.mxu1  ;;  %v827_v6 = vmul.f32 %v1433_v49, %v1433_v49 }
  0xfc   : > { %v855_v58 = vadd.f32 %v854_v53, %v824_v52  ;;  %1373 = vst [vmem:[%s1651_s20 + $0x18] sm:$0xff] %v1309_v54   ;;  %v792_v59 = vadd.f32 %v791_v51, %v581_v55  ;;  %v825_v60 = vmul.f32 %v581_v55, %v581_v55  ;;  %v1304_v61 = vpack.c.bf16 %v581_v55, %v578_v44 }
  0xfd   : > { %v1436_v62 = vpop.f32.mrf.mxu0  ;;  %1381 = vst [vmem:[%s1651_s20 + $0x58] sm:$0xff] %v1349_v56   ;;  %v1344_v63 = vpack.c.bf16 %v1673_v57, %v1667_v45  ;;  %v1679_v0 = vpop.f32.mrf.mxu1 }
  0xfe   : > { %v793_v2 = vadd.f32 %v1432_v38, %v792_v59  ;;  %v856_v3 = vadd.f32 %v855_v58, %v825_v60  ;;  %1372 = vst [vmem:[%s1651_s20 + $0x10] sm:$0xff] %v1304_v61   ;;  %v830_v26 = vmul.f32 %v1436_v62, %v1436_v62  ;;  %v836_v61 = vmul.f32 %v1644_v27, %v1644_v27 }
  0xff   : > { %v594_v4 = vpop.f32.mrf.mxu0  ;;  %1380 = vst [vmem:[%s1651_s20 + $0x50] sm:$0xff] %v1344_v63   ;;  %v1683_v5 = vpop.f32.mrf.mxu1 }
 0x100   : > { %v857_v7 = vadd.f32 %v856_v3, %v826_v1  ;;  %v794_v8 = vadd.f32 %v1433_v49, %v793_v2  ;;  %v828_v12 = vmul.f32 %v594_v4, %v594_v4  ;;  %v837_v2 = vmul.f32 %v1657_v33, %v1657_v33 }
 0x101   : > { %v1437_v9 = vpop.f32.mrf.mxu0  ;;  %v1685_v10 = vpop.f32.mrf.mxu1 }
 0x102   : > { %v795_v11 = vadd.f32 %v794_v8, %v594_v4  ;;  %v858_v13 = vadd.f32 %v857_v7, %v827_v6  ;;  %v1319_v14 = vpack.c.bf16 %v1437_v9, %v1436_v62  ;;  %v1359_v16 = vpack.c.bf16 %v1685_v10, %v1679_v0 }
 0x103   : > { %v597_v15 = vpop.f32.mrf.mxu0  ;;  %v1689_v17 = vpop.f32.mrf.mxu1  ;;  %v831_v34 = vmul.f32 %v1437_v9, %v1437_v9  ;;  %v839_v8 = vmul.f32 %v1653_v29, %v1653_v29 }
 0x104   : > { %v859_v18 = vadd.f32 %v858_v13, %v828_v12  ;;  %1375 = vst [vmem:[%s1651_s20 + $0x28] sm:$0xff] %v1319_v14   ;;  %v796_v19 = vadd.f32 %v795_v11, %v597_v15  ;;  %v829_v20 = vmul.f32 %v597_v15, %v597_v15  ;;  %v1314_v21 = vpack.c.bf16 %v597_v15, %v594_v4 }
 0x105   : > { %v1440_v22 = vpop.f32.mrf.mxu0  ;;  %1383 = vst [vmem:[%s1651_s20 + $0x68] sm:$0xff] %v1359_v16   ;;  %v1354_v23 = vpack.c.bf16 %v1689_v17, %v1683_v5  ;;  %v1695_v24 = vpop.f32.mrf.mxu1  ;;  %v838_v4 = vmul.f32 %v1642_v25, %v1642_v25  ;;  %v840_v12 = vmul.f32 %v1667_v45, %v1667_v45  ;;  %v842_v15 = vmul.f32 %v1663_v40, %v1663_v40 }
 0x106   : > { %v797_v28 = vadd.f32 %v1436_v62, %v796_v19  ;;  %v860_v30 = vadd.f32 %v859_v18, %v829_v20  ;;  %1374 = vst [vmem:[%s1651_s20 + $0x20] sm:$0xff] %v1314_v21   ;;  %v834_v54 = vmul.f32 %v1440_v22, %v1440_v22  ;;  %v844_v21 = vmul.f32 %v1683_v5, %v1683_v5 }
 0x107   : > { %v610_v31 = vpop.f32.mrf.mxu0  ;;  %1382 = vst [vmem:[%s1651_s20 + $0x60] sm:$0xff] %v1354_v23   ;;  %v1699_v32 = vpop.f32.mrf.mxu1 }
 0x108   : > { %v861_v35 = vadd.f32 %v860_v30, %v830_v26  ;;  %v798_v36 = vadd.f32 %v1437_v9, %v797_v28  ;;  %v832_v41 = vmul.f32 %v610_v31, %v610_v31  ;;  %v846_v26 = vmul.f32 %v1679_v0, %v1679_v0 }
 0x109   : > { %v1441_v37 = vpop.f32.mrf.mxu0  ;;  %v1701_v38 = vpop.f32.mrf.mxu1 }
 0x10a   : > { %v799_v39 = vadd.f32 %v798_v36, %v610_v31  ;;  %v862_v42 = vadd.f32 %v861_v35, %v831_v34  ;;  %v1329_v43 = vpack.c.bf16 %v1441_v37, %v1440_v22  ;;  %v1369_v46 = vpack.c.bf16 %v1701_v38, %v1695_v24 }
 0x10b   : > { %v613_v44 = vpop.f32.mrf.mxu0  ;;  %v677_v47 = vpop.f32.mrf.mxu1  ;;  %v835_v58 = vmul.f32 %v1441_v37, %v1441_v37  ;;  %v848_v35 = vmul.f32 %v1699_v32, %v1699_v32 }
 0x10c   : > { %v863_v48 = vadd.f32 %v862_v42, %v832_v41  ;;  %1377 = vst [vmem:[%s1651_s20 + $0x38] sm:$0xff] %v1329_v43   ;;  %v800_v49 = vadd.f32 %v799_v39, %v613_v44  ;;  %v833_v51 = vmul.f32 %v613_v44, %v613_v44  ;;  %v1324_v52 = vpack.c.bf16 %v613_v44, %v610_v31 }
 0x10d   : > { %1385 = vst [vmem:[%s1651_s20 + $0x78] sm:$0xff] %v1369_v46   ;;  %v1364_v53 = vpack.c.bf16 %v677_v47, %v1699_v32  ;;  %v849_v39 = vmul.f32 %v677_v47, %v677_v47 }
 0x10e   : > { %v801_v55 = vadd.f32 %v1440_v22, %v800_v49  ;;  %v864_v56 = vadd.f32 %v863_v48, %v833_v51  ;;  %1376 = vst [vmem:[%s1651_s20 + $0x30] sm:$0xff] %v1324_v52  }
 0x10f   : > { %1384 = vst [vmem:[%s1651_s20 + $0x70] sm:$0xff] %v1364_v53  }
 0x110   : > { %v802_v59 = vadd.f32 %v1441_v37, %v801_v55  ;;  %v865_v60 = vadd.f32 %v864_v56, %v834_v54 }
 0x112   : > { %v866_v62 = vadd.f32 %v865_v60, %v835_v58  ;;  %v803_v63 = vadd.f32 %v802_v59, %v1644_v27 }
 0x114   : > { %v804_v1 = vadd.f32 %v803_v63, %v1657_v33  ;;  %v867_v3 = vadd.f32 %v866_v62, %v836_v61 }
 0x116   : > { %v805_v6 = vadd.f32 %v1642_v25, %v804_v1  ;;  %v868_v7 = vadd.f32 %v867_v3, %v837_v2  ;;  %v841_v25 = vmul.f32 %v1673_v57, %v1673_v57 }
 0x118   : > { %v869_v9 = vadd.f32 %v868_v7, %v838_v4  ;;  %v806_v11 = vadd.f32 %v1653_v29, %v805_v6  ;;  %v843_v29 = vmul.f32 %v1669_v50, %v1669_v50 }
 0x11a   : > { %v807_v27 = vadd.f32 %v806_v11, %v1667_v45  ;;  %v870_v13 = vadd.f32 %v869_v9, %v839_v8 }
 0x11c   : > { %v871_v33 = vadd.f32 %v870_v13, %v840_v12  ;;  %v808_v14 = vadd.f32 %v807_v27, %v1673_v57 }
 0x11e   : > { %v809_v16 = vadd.f32 %v1663_v40, %v808_v14  ;;  %v872_v18 = vadd.f32 %v871_v33, %v841_v25  ;;  %v845_v40 = vmul.f32 %v1689_v17, %v1689_v17 }
 0x120   : > { %v873_v19 = vadd.f32 %v872_v18, %v842_v15  ;;  %v810_v45 = vadd.f32 %v1669_v50, %v809_v16  ;;  %v847_v50 = vmul.f32 %v1685_v10, %v1685_v10 }
 0x122   : > { %v811_v20 = vadd.f32 %v810_v45, %v1683_v5  ;;  %v874_v22 = vadd.f32 %v873_v19, %v843_v29 }
 0x124   : > { %v875_v57 = vadd.f32 %v874_v22, %v844_v21  ;;  %v812_v23 = vadd.f32 %v811_v20, %v1689_v17 }
 0x126   : > { %v813_v28 = vadd.f32 %v1679_v0, %v812_v23  ;;  %v876_v30 = vadd.f32 %v875_v57, %v845_v40  ;;  %v850_v0 = vmul.f32 %v1695_v24, %v1695_v24 }
 0x128   : > { %v877_v31 = vadd.f32 %v876_v30, %v846_v26  ;;  %v814_v5 = vadd.f32 %v1685_v10, %v813_v28  ;;  %v851_v10 = vmul.f32 %v1701_v38, %v1701_v38 }
 0x12a   : > { %v815_v34 = vadd.f32 %v814_v5, %v1699_v32  ;;  %v878_v17 = vadd.f32 %v877_v31, %v847_v50 }
 0x12c   : > { %v879_v36 = vadd.f32 %v878_v17, %v848_v35  ;;  %v816_v37 = vadd.f32 %v815_v34, %v677_v47 }
 0x12e   : > { %v817_v41 = vadd.f32 %v1695_v24, %v816_v37  ;;  %v880_v42 = vadd.f32 %v879_v36, %v849_v39 }
 0x130   : > { %v818_v32 = vadd.f32 %v1701_v38, %v817_v41  ;;  %v881_v43 = vadd.f32 %v880_v42, %v850_v0 }
 0x132   : > { %819 = vst [vmem:[%s262_s24] sm:$0xff] %v818_v32  ;;  %v882_v44 = vadd.f32 %v881_v43, %v851_v10 }
 0x134   : > { %883 = vst [vmem:[%s266_s26] sm:$0xff] %v882_v44 }
 0x135 PF: > { %s15_s17 = sadd.s32 1, %s1544_s17   ;;  %s1777_s15 = smov %s1540_s16 }
 0x136   : > { %p12_p6 = scmp.ge.s32.totalorder %s15_s17, 4   ;;  %s1778_s16 = smov %s1780_s18 }
 0x138   :  { %14 = sbr.rel (!%p12_p6) target bundleno = 2 (0x2), region = 93 }

</bundles_post_ra>
